<compile_context>
chip_gen: v6e
topology: v6e:2x2x1
jax: 0.10.0
libtpu: 0.0.40
codegen_flags: <defaults>
</compile_context>

<pallas_src>
import jax
import jax.numpy as jnp
from jax.experimental import pallas as pl
from jax.experimental.pallas import tpu as pltpu

_HIDDEN = 256
_TB_MAX = 2048     # max batch rows per grid step (VMEM-safe on v5e/v6e/v7x)
_SPLIT_MIN = 256   # min rows/tile when force-splitting a 1-step grid for dual-TC v7x


def _round_up(x, m):
    return ((x + m - 1) // m) * m


def _cdiv(a, b):
    return -(-a // b)


def _tail(h1_bf16, w2_ref, b2_ref, w3_ref, b3_ref, o_ref):
    # ---- layer 2 (MXU) + f32 epilogue ----
    h2 = (jnp.dot(h1_bf16, w2_ref[...], preferred_element_type=jnp.float32)
          + b2_ref[...])
    h2 = jnp.maximum(h2, 0.0)
    # ---- head (256 -> 1): VPU multiply + cross-lane reduce; lane-dense (tb,) store ----
    q = jnp.sum(h2 * w3_ref[...], axis=-1) + b3_ref[0]
    o_ref[...] = q.astype(o_ref.dtype)


def _critic_kernel_merged(x_ref, w1_ref, b1_ref, w2_ref, b2_ref, w3_ref, b3_ref,
                          o_ref):
    # x_ref = [states | actions] pre-packed bf16 -> single K=(obs+act) MXU pass.
    h1 = (jnp.dot(x_ref[...], w1_ref[...], preferred_element_type=jnp.float32)
          + b1_ref[...])
    h1 = jnp.maximum(h1.astype(jnp.bfloat16), 0)
    _tail(h1, w2_ref, b2_ref, w3_ref, b3_ref, o_ref)


def _critic_kernel_split(s_ref, a_ref, w1s_ref, w1a_ref, b1_ref,
                         w2_ref, b2_ref, w3_ref, b3_ref, o_ref):
    # Ensemble-broadcast path: split-W1 dot-sum replaces concat(states, actions)
    # without materializing N copies of states.
    s = s_ref[...].astype(jnp.bfloat16)
    a = a_ref[...].astype(jnp.bfloat16)
    h1 = (jnp.dot(s, w1s_ref[...], preferred_element_type=jnp.float32)
          + jnp.dot(a, w1a_ref[...], preferred_element_type=jnp.float32)
          + b1_ref[...])
    h1 = jnp.maximum(h1.astype(jnp.bfloat16), 0)
    _tail(h1, w2_ref, b2_ref, w3_ref, b3_ref, o_ref)


def critic_forward(states, actions, params):
    """Pallas implementation of Critic.forward.

    states:  [..., obs_size]
    actions: [..., act_size] with the same leading dims, OR one extra leading
             (ensemble) dim — mirroring the torch.stack branch of the reference,
             but without materializing N copies of `states`.
    params:  (w1, b1, w2, b2, w3, b3) with weights stored as (in, out).
    """
    w1, b1, w2, b2, w3, b3 = params
    obs_size = states.shape[-1]
    act_size = actions.shape[-1]

    if actions.ndim == states.ndim + 1:
        ensemble = actions.shape[0]
        assert actions.shape[1:-1] == states.shape[:-1]
        lead_shape = actions.shape[:-1]
    elif actions.ndim == states.ndim:
        ensemble = 1
        assert actions.shape[:-1] == states.shape[:-1]
        lead_shape = states.shape[:-1]
    else:
        raise ValueError("actions must have the same leading dims as states, "
                         "or exactly one extra leading (ensemble) dim")

    s2 = states.reshape(-1, obs_size)                      # (B, obs)
    a3 = actions.reshape(ensemble, -1, act_size)           # (E, B, act)
    B = s2.shape[0]

    # --- tile choice: balanced tiles; >=2 parallel steps so v7x's 2nd TC isn't idle ---
    n_tiles = _cdiv(B, _TB_MAX)
    if ensemble * n_tiles == 1 and B >= 2 * _SPLIT_MIN:
        n_tiles = 2
    tb = _round_up(_cdiv(B, n_tiles), 8)
    b_pad = tb * n_tiles

    if b_pad != B:
        s2 = jnp.pad(s2, ((0, b_pad - B), (0, 0)))
        a3 = jnp.pad(a3, ((0, 0), (0, b_pad - B), (0, 0)))

    # --- kernel-format parameters: bf16 matmul weights, f32 epilogues ---
    w2b = w2.astype(jnp.bfloat16)                          # (256, 256)
    b1f = b1.reshape(1, _HIDDEN).astype(jnp.float32)
    b2f = b2.reshape(1, _HIDDEN).astype(jnp.float32)
    w3r = w3.reshape(1, _HIDDEN).astype(jnp.float32)       # head weight as (1, 256)
    b3s = b3.reshape(1).astype(jnp.float32)                # SMEM scalar

    const2 = lambda i, e: (0, 0)                           # resident weights/biases
    common_specs = [
        pl.BlockSpec((1, _HIDDEN), const2),                # b1
        pl.BlockSpec((_HIDDEN, _HIDDEN), const2),          # w2
        pl.BlockSpec((1, _HIDDEN), const2),                # b2
        pl.BlockSpec((1, _HIDDEN), const2),                # w3 row
        pl.BlockSpec(memory_space=pltpu.MemorySpace.SMEM),  # b3 scalar
    ]
    # Lane-dense output: batch rows map to lanes; wrapper reshapes back to (..., 1).
    out_shape = jax.ShapeDtypeStruct((ensemble, n_tiles, tb), jnp.float32)
    out_spec = pl.BlockSpec((None, None, tb), lambda i, e: (e, i, 0))
    compiler_params = pltpu.CompilerParams(
        dimension_semantics=("parallel", "parallel"),
        vmem_limit_bytes=32 * 1024 * 1024)

    hidden_flops = _HIDDEN * _HIDDEN + _HIDDEN

    if ensemble == 1:
        # --- merged layer 1: one K=(obs+act) matmul instead of two tiny-K passes ---
        x = jnp.concatenate([s2, a3[0]], axis=-1).astype(jnp.bfloat16)  # (b_pad, obs+act)
        w1b = w1.astype(jnp.bfloat16)                                   # (obs+act, 256)
        in_dim = obs_size + act_size
        flops = 2 * b_pad * (in_dim * _HIDDEN + hidden_flops)
        bytes_accessed = (b_pad * in_dim * 2 + b_pad * 4
                          + (w1b.size + w2b.size) * 2
                          + (b1f.size + b2f.size + w3r.size + b3s.size) * 4)
        out = pl.pallas_call(
            _critic_kernel_merged,
            out_shape=out_shape,
            grid=(n_tiles, ensemble),
            in_specs=[pl.BlockSpec((tb, in_dim), lambda i, e: (i, 0)),
                      pl.BlockSpec((in_dim, _HIDDEN), const2)] + common_specs,
            out_specs=out_spec,
            compiler_params=compiler_params,
            cost_estimate=pl.CostEstimate(flops=int(flops), transcendentals=0,
                                          bytes_accessed=int(bytes_accessed)),
        )(x, w1b, b1f, w2b, b2f, w3r, b3s)
    else:
        # --- ensemble-broadcast path: split W1, states tile reused across ensemble ---
        w1s = w1[:obs_size].astype(jnp.bfloat16)            # (obs, 256)
        w1a = w1[obs_size:].astype(jnp.bfloat16)            # (act, 256)
        flops = 2 * ensemble * b_pad * (obs_size * _HIDDEN + act_size * _HIDDEN
                                        + hidden_flops)
        bytes_accessed = (b_pad * obs_size * 4
                          + ensemble * b_pad * act_size * 4
                          + ensemble * b_pad * 4
                          + (w1s.size + w1a.size + w2b.size) * 2
                          + (b1f.size + b2f.size + w3r.size + b3s.size) * 4)
        out = pl.pallas_call(
            _critic_kernel_split,
            out_shape=out_shape,
            grid=(n_tiles, ensemble),
            in_specs=[
                # states: index_map ignores the ensemble axis -> same tile reused
                pl.BlockSpec((tb, obs_size), lambda i, e: (i, 0)),
                # actions: ensemble dim squeezed out of the kernel view
                pl.BlockSpec((None, tb, act_size), lambda i, e: (e, i, 0)),
                pl.BlockSpec((obs_size, _HIDDEN), const2),
                pl.BlockSpec((act_size, _HIDDEN), const2),
            ] + common_specs,
            out_specs=out_spec,
            compiler_params=compiler_params,
            cost_estimate=pl.CostEstimate(flops=int(flops), transcendentals=0,
                                          bytes_accessed=int(bytes_accessed)),
        )(s2, a3, w1s, w1a, b1f, w2b, b2f, w3r, b3s)

    out = out.reshape(ensemble, b_pad)[:, :B]               # drop batch padding
    return out.reshape(lead_shape + (1,))


def init_critic_params(key, act_size, obs_size):
    """nn.Linear-style init: U(-1/sqrt(fan_in), 1/sqrt(fan_in)).

    Weights stored as (in_features, out_features); biases as (1, out_features).
    """
    dims = [act_size + obs_size, 256, 256, 1]
    params = []
    for i in range(3):
        fan_in, fan_out = dims[i], dims[i + 1]
        key, kw, kb = jax.random.split(key, 3)
        bound = 1.0 / jnp.sqrt(float(fan_in))
        w = jax.random.uniform(kw, (fan_in, fan_out), jnp.float32, -bound, bound)
        b = jax.random.uniform(kb, (1, fan_out), jnp.float32, -bound, bound)
        params += [w, b]
    return tuple(params)


def _reference_forward(states, actions, params):
    """Pure-JAX reference with the same dtype policy (bf16 matmuls, f32 accumulate)."""
    w1, b1, w2, b2, w3, b3 = params
    if actions.ndim != states.ndim:
        states = jnp.stack([states] * actions.shape[0], axis=0)
    x = jnp.concatenate([states, actions], axis=-1)
    h1 = jnp.maximum(jnp.dot(x.astype(jnp.bfloat16), w1.astype(jnp.bfloat16),
                             preferred_element_type=jnp.float32) + b1, 0.0)
    h2 = jnp.maximum(jnp.dot(h1.astype(jnp.bfloat16), w2.astype(jnp.bfloat16),
                             preferred_element_type=jnp.float32) + b2, 0.0)
    return h2 @ w3 + b3


if __name__ == "__main__":
    key = jax.random.PRNGKey(0)

    obs_size = 24
    act_size = 8
    batch = 8
    ensemble = 2

    k_params, k_s, k_a, k_ae, k_s2, k_a2 = jax.random.split(key, 6)
    params = init_critic_params(k_params, act_size, obs_size)

    states = jax.random.normal(k_s, (batch, obs_size), jnp.float32)
    actions = jax.random.normal(k_a, (batch, act_size), jnp.float32)
    actions_ens = jax.random.normal(k_ae, (ensemble, batch, act_size), jnp.float32)

    # --- plain batch path (merged layer-1 kernel) ---
    q = jax.block_until_ready(critic_forward(states, actions, params))
    assert q.shape == (batch, 1), q.shape
    ref = _reference_forward(states, actions, params)
    assert jnp.allclose(q, ref, atol=2e-3, rtol=2e-3), float(jnp.abs(q - ref).max())

    # --- ensemble-broadcast path (split layer-1 kernel, states not duplicated) ---
    qe = jax.block_until_ready(critic_forward(states, actions_ens, params))
    assert qe.shape == (ensemble, batch, 1), qe.shape
    refe = _reference_forward(states, actions_ens, params)
    assert jnp.allclose(qe, refe, atol=2e-3, rtol=2e-3), float(jnp.abs(qe - refe).max())

    # --- multi-tile path: >=2 parallel grid steps + batch-row padding exercised ---
    big_b = 552
    states_b = jax.random.normal(k_s2, (big_b, obs_size), jnp.float32)
    actions_b = jax.random.normal(k_a2, (big_b, act_size), jnp.float32)
    qb = jax.block_until_ready(critic_forward(states_b, actions_b, params))
    assert qb.shape == (big_b, 1), qb.shape
    refb = _reference_forward(states_b, actions_b, params)
    assert jnp.allclose(qb, refb, atol=2e-3, rtol=2e-3), float(jnp.abs(qb - refb).max())

    print("KERNEL_OK")
</pallas_src>

<mosaic_0001>
module attributes {stable_mosaic.version = 11 : i64} {
  func.func @_critic_kernel_merged(%arg0: i32, %arg1: i32, %arg2: memref<8x32xbf16, #tpu.memory_space<vmem>>, %arg3: memref<32x256xbf16, #tpu.memory_space<vmem>>, %arg4: memref<1x256xf32, #tpu.memory_space<vmem>>, %arg5: memref<256x256xbf16, #tpu.memory_space<vmem>>, %arg6: memref<1x256xf32, #tpu.memory_space<vmem>>, %arg7: memref<1x256xf32, #tpu.memory_space<vmem>>, %arg8: memref<1xf32, #tpu.memory_space<smem>>, %arg9: memref<1x1x8xf32, #tpu.memory_space<vmem>>) attributes {dimension_semantics = [#tpu.dimension_semantics<parallel>, #tpu.dimension_semantics<parallel>], iteration_bounds = array<i64: 1, 1>, scalar_prefetch = 0 : i64, scratch_operands = 0 : i64, tpu.core_type = #tpu.core_type<tc>, window_params = [{transform_indices = @transform_0, window_bounds = array<i64: 8, 32>}, {pipeline_mode = #tpu.pipeline_mode<synchronous>, transform_indices = @transform_1, window_bounds = array<i64: 32, 256>}, {pipeline_mode = #tpu.pipeline_mode<synchronous>, transform_indices = @transform_2, window_bounds = array<i64: 1, 256>}, {pipeline_mode = #tpu.pipeline_mode<synchronous>, transform_indices = @transform_3, window_bounds = array<i64: 256, 256>}, {pipeline_mode = #tpu.pipeline_mode<synchronous>, transform_indices = @transform_4, window_bounds = array<i64: 1, 256>}, {pipeline_mode = #tpu.pipeline_mode<synchronous>, transform_indices = @transform_5, window_bounds = array<i64: 1, 256>}, {transform_indices = @transform_6, window_bounds = array<i64: 1>}, {transform_indices = @transform_7, window_bounds = array<i64: 1, 1, 8>}]} {
    %c0 = arith.constant 0 : index
    %c0_0 = arith.constant 0 : index
    %0 = vector.load %arg2[%c0, %c0_0] : memref<8x32xbf16, #tpu.memory_space<vmem>>, vector<8x32xbf16>
    %c0_1 = arith.constant 0 : index
    %c0_2 = arith.constant 0 : index
    %1 = vector.load %arg3[%c0_1, %c0_2] : memref<32x256xbf16, #tpu.memory_space<vmem>>, vector<32x256xbf16>
    %cst = arith.constant dense<0.000000e+00> : vector<8x256xf32>
    %2 = tpu.matmul %0, %1, %cst {dimension_numbers = #tpu.dot_dimension_numbers<[1], [0], [0], [1], [0, 0, 1, 1], [], []>} : vector<8x32xbf16>, vector<32x256xbf16>, vector<8x256xf32> -> vector<8x256xf32>
    %c0_3 = arith.constant 0 : index
    %c0_4 = arith.constant 0 : index
    %3 = vector.load %arg4[%c0_3, %c0_4] : memref<1x256xf32, #tpu.memory_space<vmem>>, vector<1x256xf32>
    %4 = vector.broadcast %3 : vector<1x256xf32> to vector<8x256xf32>
    %5 = arith.addf %2, %4 : vector<8x256xf32>
    %6 = arith.truncf %5 : vector<8x256xf32> to vector<8x256xbf16>
    %cst_5 = arith.constant 0.000000e+00 : bf16
    %7 = vector.broadcast %cst_5 : bf16 to vector<8x256xbf16>
    %8 = arith.maximumf %6, %7 : vector<8x256xbf16>
    %c0_6 = arith.constant 0 : index
    %c0_7 = arith.constant 0 : index
    %9 = vector.load %arg5[%c0_6, %c0_7] : memref<256x256xbf16, #tpu.memory_space<vmem>>, vector<256x256xbf16>
    %cst_8 = arith.constant dense<0.000000e+00> : vector<8x256xf32>
    %10 = tpu.matmul %8, %9, %cst_8 {dimension_numbers = #tpu.dot_dimension_numbers<[1], [0], [0], [1], [0, 0, 1, 1], [], []>} : vector<8x256xbf16>, vector<256x256xbf16>, vector<8x256xf32> -> vector<8x256xf32>
    %c0_9 = arith.constant 0 : index
    %c0_10 = arith.constant 0 : index
    %11 = vector.load %arg6[%c0_9, %c0_10] : memref<1x256xf32, #tpu.memory_space<vmem>>, vector<1x256xf32>
    %12 = vector.broadcast %11 : vector<1x256xf32> to vector<8x256xf32>
    %13 = arith.addf %10, %12 : vector<8x256xf32>
    %cst_11 = arith.constant 0.000000e+00 : f32
    %14 = vector.broadcast %cst_11 : f32 to vector<8x256xf32>
    %15 = arith.maximumf %13, %14 : vector<8x256xf32>
    %c0_12 = arith.constant 0 : index
    %c0_13 = arith.constant 0 : index
    %16 = vector.load %arg7[%c0_12, %c0_13] : memref<1x256xf32, #tpu.memory_space<vmem>>, vector<1x256xf32>
    %17 = vector.broadcast %16 : vector<1x256xf32> to vector<8x256xf32>
    %18 = arith.mulf %15, %17 : vector<8x256xf32>
    %cst_14 = arith.constant dense<0.000000e+00> : vector<8xf32>
    %19 = vector.multi_reduction <add>, %18, %cst_14 [1] : vector<8x256xf32> to vector<8xf32>
    %c0_15 = arith.constant 0 : index
    %20 = memref.load %arg8[%c0_15] : memref<1xf32, #tpu.memory_space<smem>>
    %21 = vector.broadcast %20 : f32 to vector<8xf32>
    %22 = arith.addf %19, %21 : vector<8xf32>
    %c0_16 = arith.constant 0 : index
    %c0_17 = arith.constant 0 : index
    %c0_18 = arith.constant 0 : index
    %23 = vector.load %arg9[%c0_16, %c0_17, %c0_18] : memref<1x1x8xf32, #tpu.memory_space<vmem>>, vector<1x1x8xf32>
    %24 = vector.shape_cast %23 : vector<1x1x8xf32> to vector<8xf32>
    %25 = vector.shape_cast %22 : vector<8xf32> to vector<1x1x8xf32>
    tpu.vector_store %arg9[%c0_16, %c0_17, %c0_18], %25 {strides = array<i32>} : memref<1x1x8xf32, #tpu.memory_space<vmem>>, vector<1x1x8xf32>,
    return
  }
  func.func @transform_0(%arg0: i32, %arg1: i32) -> (i32, i32) {
    %c0_i32 = arith.constant 0 : i32
    %c0_i32_0 = arith.constant 0 : i32
    return %arg0, %c0_i32 : i32, i32
  }
  func.func @transform_1(%arg0: i32, %arg1: i32) -> (i32, i32) {
    %c0_i32 = arith.constant 0 : i32
    %c0_i32_0 = arith.constant 0 : i32
    %c0_i32_1 = arith.constant 0 : i32
    return %c0_i32, %c0_i32_0 : i32, i32
  }
  func.func @transform_2(%arg0: i32, %arg1: i32) -> (i32, i32) {
    %c0_i32 = arith.constant 0 : i32
    %c0_i32_0 = arith.constant 0 : i32
    %c0_i32_1 = arith.constant 0 : i32
    return %c0_i32, %c0_i32_0 : i32, i32
  }
  func.func @transform_3(%arg0: i32, %arg1: i32) -> (i32, i32) {
    %c0_i32 = arith.constant 0 : i32
    %c0_i32_0 = arith.constant 0 : i32
    %c0_i32_1 = arith.constant 0 : i32
    return %c0_i32, %c0_i32_0 : i32, i32
  }
  func.func @transform_4(%arg0: i32, %arg1: i32) -> (i32, i32) {
    %c0_i32 = arith.constant 0 : i32
    %c0_i32_0 = arith.constant 0 : i32
    %c0_i32_1 = arith.constant 0 : i32
    return %c0_i32, %c0_i32_0 : i32, i32
  }
  func.func @transform_5(%arg0: i32, %arg1: i32) -> (i32, i32) {
    %c0_i32 = arith.constant 0 : i32
    %c0_i32_0 = arith.constant 0 : i32
    %c0_i32_1 = arith.constant 0 : i32
    return %c0_i32, %c0_i32_0 : i32, i32
  }
  func.func @transform_6(%arg0: i32, %arg1: i32) -> i32 {
    %c0_i32 = arith.constant 0 : i32
    %c0_i32_0 = arith.constant 0 : i32
    return %c0_i32 : i32
  }
  func.func @transform_7(%arg0: i32, %arg1: i32) -> (i32, i32, i32) {
    %c0_i32 = arith.constant 0 : i32
    %c0_i32_0 = arith.constant 0 : i32
    return %arg1, %arg0, %c0_i32 : i32, i32, i32
  }
}

</mosaic_0001>

<bundles_post_ra>
// kernel: tpu_custom_call.1
= control target key start
LH: loop header
LB: loop body
LE: loop exit
PB: predicated region body
PF: predicated region fallthrough
CT: control target
= control target key end

     0   :  { %13 = vsyncpa [#allocation4], 0  ;;  %s705_s0 = inlined_call_operand.hbm [shape: bf16[8,32], index: 0, kind: input, shape index: {}]   ;;  %s706_s1 = inlined_call_operand.hbm [shape: bf16[32,256], index: 1, kind: input, shape index: {}]   ;;  %s707_s2 = inlined_call_operand.vmem [shape: f32[1,256], index: 2, kind: input, shape index: {}]   ;;  %s708_s3 = inlined_call_operand.hbm [shape: bf16[256,256], index: 3, kind: input, shape index: {}]   ;;  %s709_s4 = inlined_call_operand.vmem [shape: f32[1,256], index: 4, kind: input, shape index: {}]   ;;  %s710_s5 = inlined_call_operand.vmem [shape: f32[1,256], index: 5, kind: input, shape index: {}]   ;;  %s711_s6 = inlined_call_operand.<no memory space> [shape: f32[1], index: 6, kind: input, shape index: {}]   ;;  %s712_s7 = inlined_call_operand.hbm [shape: f32[1,1,8], index: 7, kind: output, shape index: {}]  }
   0x1   :  { %14 = vsyncpa [#allocation7], 0 }
   0x2   :  { %15 = vsyncpa [#allocation5], 0  ;;  %s631_s24 = smov [#allocation6]  }
   0x3   :  { %s31_s25 = sshll.u32 %s631_s24, 4  ;;  %s32_s25 = int_to_ptr.vmem [resolvable:$true] %s31_s25 }
   0x4   :  { %s553_s26 = scalar_lea.vmem %s32_s25, 512  ;;  %p558_p1 = scmp.lt.s32.totalorder %s32_s25, %s32_s25 }
   0x5   :  { %p554_p0 = scmp.ne.s32.totalorder %s32_s25, %s553_s26  ;;  %p559_p2 = scmp.lt.s32.totalorder %s553_s26, %s553_s26 }
   0x7   :  { %p560_p3 = por %p559_p2, %p558_p1 }
   0x9   :  { %p561_p4 = pnand %p560_p3, %p554_p0 }
   0xb   :  { %564 = shalt.err (!%p561_p4)
}
   0xc   :  { %s632_s27 = smov 128   ;;  %s633_s28 = smov 8  }
   0xd   :  { %37 = dma.hbm_to_vmem [thread:$0]  %s706_s1, 512, %s32_s25, [#allocation7], %s632_s27, %s632_s27, %s633_s28  }
   0xe   :  { %s634_s8 = smov [#allocation3]   ;;  %s635_s10 = smov [#allocation8]  }
   0xf   :  { %s22_s9 = sshll.u32 %s634_s8, 4  ;;  %s45_s11 = sshll.u32 %s635_s10, 4  ;;  %s23_s9 = int_to_ptr.vmem [resolvable:$true] %s22_s9  ;;  %s46_s11 = int_to_ptr.vmem [resolvable:$true] %s45_s11 }
  0x10   :  { %s573_s12 = scalar_lea.vmem %s23_s9, 64  ;;  %p578_p6 = scmp.lt.s32.totalorder %s23_s9, %s23_s9 }
  0x11   :  { %p574_p5 = scmp.ne.s32.totalorder %s23_s9, %s573_s12  ;;  %p579_p7 = scmp.lt.s32.totalorder %s573_s12, %s573_s12 }
  0x13   :  { %p580_p8 = por %p579_p7, %p578_p6 }
  0x15   :  { %p581_p9 = pnand %p580_p8, %p574_p5 }
  0x17   :  { %584 = shalt.err (!%p581_p9)
}
  0x18   :  { %25 = dma.hbm_to_vmem [thread:$0]  %s705_s0, 64, %s23_s9, [#allocation4]  }
  0x19   :  { %s593_s15 = scalar_lea.vmem %s46_s11, 4096  ;;  %p598_p11 = scmp.lt.s32.totalorder %s46_s11, %s46_s11 }
  0x1a   :  { %p594_p10 = scmp.ne.s32.totalorder %s46_s11, %s593_s15  ;;  %p599_p12 = scmp.lt.s32.totalorder %s593_s15, %s593_s15 }
  0x1c   :  { %p600_p13 = por %p599_p12, %p598_p11 }
  0x1e   :  { %p601_p0 = pnand %p600_p13, %p594_p10 }
  0x20   :  { %604 = shalt.err (!%p601_p0)
}
  0x21   :  { %51 = dma.hbm_to_vmem [thread:$0]  %s708_s3, 4096, %s46_s11, [#allocation7], %s632_s27, %s632_s27, %s633_s28  }
  0x22   :  { %625 = dma.done.wait [#allocation4], 64  }
  0x23   :  { %626 = vsyncadd [#allocation4], 4294967232 }
  0x24   :  { %627 = dma.done.wait [#allocation7], 4608  }
  0x25   :  { %628 = vsyncadd [#allocation7], 4294962688  ;;  %v636_v0 = vmov 0   ;;  %v491_v1 = vld [vmem:[#allocation6 + $0x14] ss:$8 sps:$4 sm:$0xff]   ;;  %vm105_vm0 = vcmask 261120   ;;  %v75_v38 = vlaneseq }
  0x26   :  { %141 = vmatprep.mubr.bf16.mxu0 %v636_v0  ;;  %v493_v2 = vld [vmem:[#allocation6 + $0x10] ss:$8 sps:$4 sm:$0xff]   ;;  %121 = vmatprep.subr.bf16.mxu0 %v491_v1  ;;  %v494_v3 = vld [vmem:[#allocation6 + $0x4] ss:$8 sps:$4 sm:$0xff]   ;;  %v496_v4 = vld [vmem:[#allocation6] ss:$8 sps:$4 sm:$0xff]  }
  0x27   :  { %122 = vmatpush1.bf16.msra.mxu0 %v493_v2  ;;  %v497_v5 = vld [vmem:[#allocation8 + $0x74] ss:$8 sps:$4 sm:$0xff]   ;;  %v499_v6 = vld [vmem:[#allocation8 + $0x70] ss:$8 sps:$4 sm:$0xff]   ;;  %v500_v7 = vld [vmem:[#allocation8 + $0x64] ss:$8 sps:$4 sm:$0xff]  }
  0x28   :  { %123 = vmatprep.subr.bf16.mxu0 %v494_v3  ;;  %358 = vmatprep.subr.bf16.mxu1 %v497_v5  ;;  %v68_v8 = vld [vmem:[#allocation3] sm:$0xf]  ;;  %v502_v9 = vld [vmem:[#allocation8 + $0x60] ss:$8 sps:$4 sm:$0xff]   ;;  %v505_v11 = vld [vmem:[#allocation8 + $0x50] ss:$8 sps:$4 sm:$0xff]  }
  0x29   :  { %359 = vmatpush1.bf16.msra.mxu1 %v499_v6  ;;  %v503_v10 = vld [vmem:[#allocation8 + $0x54] ss:$8 sps:$4 sm:$0xff]   ;;  %v506_v12 = vld [vmem:[#allocation8 + $0x44] ss:$8 sps:$4 sm:$0xff]   ;;  %v508_v13 = vld [vmem:[#allocation8 + $0x40] ss:$8 sps:$4 sm:$0xff]  }
  0x2a   :  { %360 = vmatprep.subr.bf16.mxu1 %v500_v7  ;;  %v509_v14 = vld [vmem:[#allocation8 + $0x34] ss:$8 sps:$4 sm:$0xff]   ;;  %v511_v15 = vld [vmem:[#allocation8 + $0x30] ss:$8 sps:$4 sm:$0xff]   ;;  %v512_v16 = vld [vmem:[#allocation8 + $0x24] ss:$8 sps:$4 sm:$0xff]  }
  0x2b   :  { %124 = vmatpush1.bf16.msra.mxu0 %v496_v4  ;;  %v514_v17 = vld [vmem:[#allocation8 + $0x20] ss:$8 sps:$4 sm:$0xff]   ;;  %v515_v18 = vld [vmem:[#allocation8 + $0x14] ss:$8 sps:$4 sm:$0xff]   ;;  %v517_v19 = vld [vmem:[#allocation8 + $0x10] ss:$8 sps:$4 sm:$0xff]  }
  0x2c   :  { %v518_v20 = vld [vmem:[#allocation8 + $0x4] ss:$8 sps:$4 sm:$0xff]   ;;  %v520_v21 = vld [vmem:[#allocation8] ss:$8 sps:$4 sm:$0xff]   ;;  %v521_v22 = vld [vmem:[#allocation8 + $0xf4] ss:$8 sps:$4 sm:$0xff]  }
  0x2d   :  { %361 = vmatpush1.bf16.msra.mxu1 %v502_v9  ;;  %v523_v23 = vld [vmem:[#allocation8 + $0xf0] ss:$8 sps:$4 sm:$0xff]   ;;  %v524_v24 = vld [vmem:[#allocation8 + $0xe4] ss:$8 sps:$4 sm:$0xff]   ;;  %v526_v25 = vld [vmem:[#allocation8 + $0xe0] ss:$8 sps:$4 sm:$0xff]   ;;  %v419_v9 = vstv %s711_s6 }
  0x2e   :  { %451 = vmatmul.mubr.msk.bf16.vlgmr.msra.gmra.mxu0 %vm105_vm0, %v68_v8  ;;  %362 = vmatprep.subr.bf16.mxu1 %v503_v10  ;;  %v527_v26 = vld [vmem:[#allocation8 + $0xd4] ss:$8 sps:$4 sm:$0xff]   ;;  %v529_v27 = vld [vmem:[#allocation8 + $0xd0] ss:$8 sps:$4 sm:$0xff]   ;;  %v530_v28 = vld [vmem:[#allocation8 + $0xc4] ss:$8 sps:$4 sm:$0xff]  }
  0x2f   :  { %v532_v29 = vld [vmem:[#allocation8 + $0xc0] ss:$8 sps:$4 sm:$0xff]   ;;  %v533_v30 = vld [vmem:[#allocation8 + $0xb4] ss:$8 sps:$4 sm:$0xff]   ;;  %v535_v31 = vld [vmem:[#allocation8 + $0xb0] ss:$8 sps:$4 sm:$0xff]  }
  0x30   :  { %v536_v32 = vld [vmem:[#allocation8 + $0xa4] ss:$8 sps:$4 sm:$0xff]   ;;  %v538_v33 = vld [vmem:[#allocation8 + $0xa0] ss:$8 sps:$4 sm:$0xff]   ;;  %v539_v34 = vld [vmem:[#allocation8 + $0x94] ss:$8 sps:$4 sm:$0xff]  }
  0x31   :  { %363 = vmatpush1.bf16.msra.mxu1 %v505_v11  ;;  %v541_v35 = vld [vmem:[#allocation8 + $0x90] ss:$8 sps:$4 sm:$0xff]   ;;  %v542_v36 = vld [vmem:[#allocation8 + $0x84] ss:$8 sps:$4 sm:$0xff]   ;;  %v544_v37 = vld [vmem:[#allocation8 + $0x80] ss:$8 sps:$4 sm:$0xff]  }
  0x32   :  { %364 = vmatprep.subr.bf16.mxu1 %v506_v12  ;;  %v76_v39 = vshrl.u32 %v75_v38, 7  ;;  %v73_v41 = vld [vmem:[%s707_s2] sm:$0x3]  ;;  %v423_v8 = vand.u32 127, %v75_v38  ;;  %vm429_vm1 = vcmask 57344  }
  0x33   :  { %v186_v55 = vld [vmem:[%s709_s4] sm:$0x3] }
  0x34   :  { %v77_v40 = vsub.s32 0, %v76_v39  ;;  %v81_v42 = vsub.s32 1, %v76_v39  ;;  %v401_v59 = vld [vmem:[%s710_s5] sm:$0x3]  ;;  %v426_v10 = vsub.s32 %v423_v8, %v76_v39  ;;  %s637_s5 = smov [#allocation9]  }
  0x35   :  { %365 = vmatpush1.bf16.msra.mxu1 %v508_v13  ;;  %s437_s21 = sshll.u32 %s637_s5, 4  ;;  %s438_s21 = int_to_ptr.vmem [resolvable:$true] %s437_s21 }
  0x36   :  { %366 = vmatprep.subr.bf16.mxu1 %v509_v14  ;;  %v78_v43 = vrot.slane %v73_v41, %v77_v40  ;;  %v82_v44 = vrot.slane %v73_v41, %v81_v42  ;;  %v191_v56 = vrot.slane %v186_v55, %v77_v40  ;;  %v195_v57 = vrot.slane %v186_v55, %v81_v42  ;;  %s605_s22 = scalar_lea.vmem %s438_s21, 16  ;;  %s609_s23 = scalar_lea.vmem %s438_s21, 32 }
  0x37   :  { %v406_v1 = vrot.slane %v401_v59, %v77_v40  ;;  %v410_v2 = vrot.slane %v401_v59, %v81_v42  ;;  %p606_p1 = scmp.ne.s32.totalorder %s438_s21, %s605_s22  ;;  %p610_p2 = scmp.lt.s32.totalorder %s438_s21, %s438_s21 }
  0x38   :  { %p611_p3 = scmp.lt.s32.totalorder %s609_s23, %s605_s22 }
  0x39   :  { %367 = vmatpush1.bf16.msra.mxu1 %v511_v15 }
  0x3a   :  { %368 = vmatprep.subr.bf16.mxu1 %v512_v16  ;;  %p612_p4 = por %p611_p3, %p610_p2 }
  0x3c   :  { %p613_p5 = pnand %p612_p4, %p606_p1 }
  0x3d   :  { %369 = vmatpush1.bf16.msra.mxu1 %v514_v17 }
  0x3e   :  { %370 = vmatprep.subr.bf16.mxu1 %v515_v18 }
  0x41   :  { %371 = vmatpush1.bf16.msra.mxu1 %v517_v19 }
  0x42   :  { %372 = vmatprep.subr.bf16.mxu1 %v518_v20 }
  0x45   :  { %373 = vmatpush1.bf16.msra.mxu1 %v520_v21 }
  0x46   :  { %374 = vmatprep.subr.bf16.mxu1 %v521_v22 }
  0x49   :  { %375 = vmatpush2.bf16.msra.mxu1 %v523_v23 }
  0x4a   :  { %376 = vmatprep.subr.bf16.mxu1 %v524_v24 }
  0x4d   :  { %377 = vmatpush2.bf16.msra.mxu1 %v526_v25 }
  0x4e   :  { %378 = vmatprep.subr.bf16.mxu1 %v527_v26 }
  0x51   :  { %379 = vmatpush2.bf16.msra.mxu1 %v529_v27 }
  0x52   :  { %380 = vmatprep.subr.bf16.mxu1 %v530_v28 }
  0x55   :  { %381 = vmatpush2.bf16.msra.mxu1 %v532_v29 }
  0x56   :  { %382 = vmatprep.subr.bf16.mxu1 %v533_v30 }
  0x59   :  { %383 = vmatpush2.bf16.msra.mxu1 %v535_v31 }
  0x5a   :  { %384 = vmatprep.subr.bf16.mxu1 %v536_v32 }
  0x5d   :  { %385 = vmatpush2.bf16.msra.mxu1 %v538_v33 }
  0x5e   :  { %386 = vmatprep.subr.bf16.mxu1 %v539_v34 }
  0x61   :  { %387 = vmatpush2.bf16.msra.mxu1 %v541_v35 }
  0x62   :  { %388 = vmatprep.subr.bf16.mxu1 %v542_v36 }
  0x65   :  { %389 = vmatpush2.bf16.msra.mxu1 %v544_v37 }
  0xee   :  { %v143_v45 = vpop.f32.mrf.mxu0 }
  0xef   :  { %v144_v46 = vadd.f32 %v143_v45, %v78_v43 }
  0xf0   :  { %v145_v47 = vpop.f32.mrf.mxu0 }
  0xf1   :  { %v146_v48 = vadd.f32 %v145_v47, %v82_v44  ;;  %v150_v49 = vpack.c.bf16 %v144_v46, %v144_v46 }
  0xf2   :  { %v147_v50 = vpop.f32.mrf.mxu0 }
  0xf3   :  { %v151_v51 = vpack.c.bf16 %v146_v48, %v146_v48  ;;  %v152_v54 = vmax.bf16 %v636_v0, %v150_v49 }
  0xf4   :  { %v148_v52 = vpop.f32.mrf.mxu0 }
  0xf5   :  { %v153_v53 = vmax.bf16 %v636_v0, %v151_v51 }
  0xf7   :  { %390 = vmatprep.mubr.bf16.mxu1 %v153_v53 }
  0xf8   :  { %391 = vmatmul.mubr.bf16.vlgmr.msra.gmra.mxu1 %v152_v54 }
 0x1b8   :  { %v392_v58 = vpop.f32.mrf.mxu1 }
 0x1b9   :  { %v393_v60 = vadd.f32 %v392_v58, %v191_v56 }
 0x1ba   :  { %v394_v61 = vpop.f32.mrf.mxu1 }
 0x1bb   :  { %v399_v62 = vmax.f32 %v393_v60, 0.0  ;;  %v395_v63 = vadd.f32 %v394_v61, %v195_v57 }
 0x1bc   :  { %v396_v0 = vpop.f32.mrf.mxu1 }
 0x1bd   :  { %v400_v3 = vmax.f32 %v395_v63, 0.0  ;;  %v413_v5 = vmul.f32 %v406_v1, %v399_v62 }
 0x1be   :  { %v397_v4 = vpop.f32.mrf.mxu1 }
 0x1bf   :  { %v414_v6 = vmul.f32 %v410_v2, %v400_v3 }
 0x1c1   :  { %v415_v7 = vadd.f32 %v414_v6, %v413_v5 }
 0x1c3   :  { %416 = vadd.xlane.f32.xlu0 %v415_v7 }
 0x24c   :  { %v417_v11 = vpop.xlane.xlu0 %416 }
 0x24d   :  { %v420_v12 = vadd.f32 %v419_v9, %v417_v11 }
 0x24f   :  { %v427_v13 = vrot.slane %v420_v12, %v426_v10 }
 0x251   :  { %430 = vst.msk [vmem:[#allocation9] sm:$0x1] %vm429_vm1, %v427_v13 }
 0x252   :  { %616 = shalt.err (!%p613_p5)
}
 0x253   :  { %440 = dma.vmem_to_hbm [thread:$0]  %s438_s21, 16, %s712_s7, [#allocation5]  }
 0x254   :  { %629 = dma.done.wait [#allocation5], 16  }
 0x255   :  { %630 = vsyncadd [#allocation5], 4294967280 }
 0x256   :  { %444 = vsyncpa [#allocation4], 1 }
 0x257   :  { %445 = vsyncpa [#allocation7], 1 }
 0x258   :  { %446 = vsyncpa [#allocation5], 1 }

</bundles_post_ra>
